<compile_context>
chip_gen: v6e
topology: v6e:2x2x1
jax: 0.10.0
libtpu: 0.0.40
codegen_flags: <defaults>
</compile_context>

<pallas_src>
import functools

import jax
import jax.numpy as jnp
from jax.experimental import pallas as pl
from jax.experimental.pallas import tpu as pltpu


def _gcn_kernel(x_ref, wqkv_ref, wo_ref, g_ref, b_ref, o_ref, *, eps):
    # x_ref: (S, C) one batch element (f32).
    # wqkv_ref: (C, 3C) bf16 fused projection weights (Q part pre-scaled).
    # wo_ref:   (C, C)  bf16 output-transform weights.
    # g_ref/b_ref: (1, C) f32 LayerNorm affine params.
    C = x_ref.shape[-1]

    x = x_ref[...]                                # (S, C) f32, residual path
    x_bf = x.astype(wqkv_ref.dtype)               # bf16 for the MXU

    # Fused Q/K/V projection: one (S, C) x (C, 3C) matmul, f32 accumulation.
    qkv = jnp.dot(x_bf, wqkv_ref[...], preferred_element_type=jnp.float32)  # (S, 3C)
    q = qkv[:, :C]           # already carries the 1/sqrt(C) scale (folded in)
    k = qkv[:, C:2 * C]
    v = qkv[:, 2 * C:]

    # Attention scores over spatial positions: contract the channel axis of
    # both operands directly (A @ B^T form) instead of materializing k.T.
    s = jax.lax.dot_general(
        q.astype(jnp.bfloat16), k.astype(jnp.bfloat16),
        (((1,), (1,)), ((), ())),
        preferred_element_type=jnp.float32)                                  # (S, S)

    # Numerically-stable softmax over the last dim (f32).
    s = s - jnp.max(s, axis=-1, keepdims=True)
    p = jnp.exp(s)
    p = p * pl.reciprocal(jnp.sum(p, axis=-1, keepdims=True), approx=True)

    # rel = softmax(scores) @ V, then the output 1x1 conv.
    rel = jnp.dot(p.astype(jnp.bfloat16), v.astype(jnp.bfloat16),
                  preferred_element_type=jnp.float32)                        # (S, C)
    rel = jnp.dot(rel.astype(jnp.bfloat16), wo_ref[...],
                  preferred_element_type=jnp.float32)                        # (S, C)

    # Residual + LayerNorm over channels (biased variance, eps like PyTorch).
    y = x.astype(jnp.float32) + rel
    mean = jnp.mean(y, axis=-1, keepdims=True)
    cen = y - mean
    var = jnp.mean(cen * cen, axis=-1, keepdims=True)
    out = cen * jax.lax.rsqrt(var + eps) * g_ref[...] + b_ref[...]
    o_ref[...] = out.astype(o_ref.dtype)


def prepare_gcn_params(wq, wk, wv, wo, gamma, beta, compute_dtype=jnp.bfloat16):
    """One-time (load-time) weight prep: transpose to x @ W^T form, fuse
    Q/K/V into one (C, 3C) weight, fold the 1/sqrt(C) attention scale into
    the Q block, and cast matmul weights to bf16."""
    C = wq.shape[0]
    scale = 1.0 / (C ** 0.5)
    wqkv_t = jnp.concatenate(
        [wq.T * scale, wk.T, wv.T], axis=1).astype(compute_dtype)   # (C, 3C)
    wo_t = wo.T.astype(compute_dtype)                               # (C, C)
    gamma2 = gamma.reshape(1, C).astype(jnp.float32)
    beta2 = beta.reshape(1, C).astype(jnp.float32)
    return wqkv_t, wo_t, gamma2, beta2


def gcn_module_forward(x, wqkv_t, wo_t, gamma2, beta2, *, eps=1e-5):
    """x: (B, C, H, W) NCHW. wqkv_t/wo_t/gamma2/beta2 from prepare_gcn_params.
    Returns (B, C, H, W)."""
    B, C, H, W = x.shape
    S = H * W

    # NCHW -> (B, S, C): 1x1 convs become per-position channel matmuls in
    # this layout.  Under jit these shuffles fuse with surrounding ops.
    # TODO(synk): for large production S, feed (B, C, S) directly and pad S
    # to a multiple of 128 to keep the score tensor lane-dense.
    x_seq = jnp.transpose(x.reshape(B, C, S), (0, 2, 1))            # (B, S, C)

    kernel = functools.partial(_gcn_kernel, eps=eps)

    out_seq = pl.pallas_call(
        kernel,
        out_shape=jax.ShapeDtypeStruct((B, S, C), x.dtype),
        grid=(B,),
        in_specs=[
            pl.BlockSpec((pl.Squeezed(), S, C), lambda b: (b, 0, 0)),
            pl.BlockSpec((C, 3 * C), lambda b: (0, 0)),
            pl.BlockSpec((C, C), lambda b: (0, 0)),
            pl.BlockSpec((1, C), lambda b: (0, 0)),
            pl.BlockSpec((1, C), lambda b: (0, 0)),
        ],
        out_specs=pl.BlockSpec((pl.Squeezed(), S, C), lambda b: (b, 0, 0)),
        compiler_params=pltpu.CompilerParams(
            dimension_semantics=("parallel",)),
    )(x_seq, wqkv_t, wo_t, gamma2, beta2)

    # (B, S, C) -> (B, C, H, W)
    return jnp.transpose(out_seq, (0, 2, 1)).reshape(B, C, H, W)


def _reference_forward(x, wq, wk, wv, wo, gamma, beta, eps=1e-5):
    """Pure-JAX f32 reference mirroring the PyTorch forward (dropout = identity)."""
    B, C, H, W = x.shape
    scale = 1.0 / (C ** 0.5)
    xf = x.astype(jnp.float32).reshape(B, C, H * W)
    proj = lambda w: jnp.einsum('oc,bcs->bos', w.astype(jnp.float32), xf)
    q = jnp.transpose(proj(wq), (0, 2, 1))         # (B, S, C)
    k = proj(wk)                                   # (B, C, S)
    v = jnp.transpose(proj(wv), (0, 2, 1))         # (B, S, C)
    w_attn = jax.nn.softmax(jnp.einsum('bsc,bct->bst', q, k) * scale, axis=-1)
    rel = jnp.einsum('bst,btc->bsc', w_attn, v)    # (B, S, C)
    rel = jnp.einsum('oc,bsc->bso', wo.astype(jnp.float32), rel)
    y = jnp.transpose(xf, (0, 2, 1)) + rel         # (B, S, C)
    mean = jnp.mean(y, axis=-1, keepdims=True)
    var = jnp.mean((y - mean) ** 2, axis=-1, keepdims=True)
    y = (y - mean) / jnp.sqrt(var + eps) * gamma + beta
    return jnp.transpose(y, (0, 2, 1)).reshape(B, C, H, W).astype(x.dtype)


if __name__ == "__main__":
    # Small but TPU-friendly shapes: B=2, C=128 channels, 8x8 spatial (S=64).
    B, C, H, W = 2, 128, 8, 8

    key = jax.random.PRNGKey(0)
    kx, kq, kk, kv, ko = jax.random.split(key, 5)

    x = jax.random.normal(kx, (B, C, H, W), dtype=jnp.float32)

    # c2_msra_fill: kaiming normal, fan_out, relu -> std = sqrt(2 / fan_out),
    # fan_out = C_out * kh * kw = C for a 1x1 conv.  (C_out, C_in) weights.
    std = (2.0 / C) ** 0.5
    wq = std * jax.random.normal(kq, (C, C), dtype=jnp.float32)
    wk = std * jax.random.normal(kk, (C, C), dtype=jnp.float32)
    wv = std * jax.random.normal(kv, (C, C), dtype=jnp.float32)
    wo = std * jax.random.normal(ko, (C, C), dtype=jnp.float32)

    # LayerNorm default init
    gamma = jnp.ones((C,), dtype=jnp.float32)
    beta = jnp.zeros((C,), dtype=jnp.float32)

    # One-time weight prep (hoisted out of the hot path), then a jitted forward.
    params = prepare_gcn_params(wq, wk, wv, wo, gamma, beta)
    fwd = jax.jit(gcn_module_forward)

    out = jax.block_until_ready(fwd(x, *params))

    ref = _reference_forward(x, wq, wk, wv, wo, gamma, beta)
    assert out.shape == (B, C, H, W)
    # bf16 MXU operands (per perf review) -> relaxed tolerance vs f32 reference.
    assert jnp.allclose(out, ref, atol=1e-1, rtol=1e-1), "mismatch vs reference"

    print("KERNEL_OK")
</pallas_src>

<mosaic_0001>
module attributes {stable_mosaic.version = 11 : i64} {
  func.func @_gcn_kernel(%arg0: i32, %arg1: memref<1x64x128xf32, #tpu.memory_space<vmem>>, %arg2: memref<128x384xbf16, #tpu.memory_space<vmem>>, %arg3: memref<128x128xbf16, #tpu.memory_space<vmem>>, %arg4: memref<1x128xf32, #tpu.memory_space<vmem>>, %arg5: memref<1x128xf32, #tpu.memory_space<vmem>>, %arg6: memref<1x64x128xf32, #tpu.memory_space<vmem>>) attributes {dimension_semantics = [#tpu.dimension_semantics<parallel>], iteration_bounds = array<i64: 2>, scalar_prefetch = 0 : i64, scratch_operands = 0 : i64, tpu.core_type = #tpu.core_type<tc>, window_params = [{transform_indices = @transform_0, window_bounds = array<i64: 1, 64, 128>}, {pipeline_mode = #tpu.pipeline_mode<synchronous>, transform_indices = @transform_1, window_bounds = array<i64: 128, 384>}, {pipeline_mode = #tpu.pipeline_mode<synchronous>, transform_indices = @transform_2, window_bounds = array<i64: 128, 128>}, {pipeline_mode = #tpu.pipeline_mode<synchronous>, transform_indices = @transform_3, window_bounds = array<i64: 1, 128>}, {pipeline_mode = #tpu.pipeline_mode<synchronous>, transform_indices = @transform_4, window_bounds = array<i64: 1, 128>}, {transform_indices = @transform_5, window_bounds = array<i64: 1, 64, 128>}]} {
    %c0 = arith.constant 0 : index
    %c0_0 = arith.constant 0 : index
    %c0_1 = arith.constant 0 : index
    %0 = vector.load %arg1[%c0, %c0_0, %c0_1] : memref<1x64x128xf32, #tpu.memory_space<vmem>>, vector<1x64x128xf32>
    %1 = vector.shape_cast %0 : vector<1x64x128xf32> to vector<64x128xf32>
    %2 = arith.truncf %1 : vector<64x128xf32> to vector<64x128xbf16>
    %c0_2 = arith.constant 0 : index
    %c0_3 = arith.constant 0 : index
    %3 = vector.load %arg2[%c0_2, %c0_3] : memref<128x384xbf16, #tpu.memory_space<vmem>>, vector<128x384xbf16>
    %cst = arith.constant dense<0.000000e+00> : vector<64x384xf32>
    %4 = tpu.matmul %2, %3, %cst {dimension_numbers = #tpu.dot_dimension_numbers<[1], [0], [0], [1], [0, 0, 1, 1], [], []>} : vector<64x128xbf16>, vector<128x384xbf16>, vector<64x384xf32> -> vector<64x384xf32>
    %5 = vector.extract_strided_slice %4 {offsets = [0, 0], sizes = [64, 128], strides = [1, 1]} : vector<64x384xf32> to vector<64x128xf32>
    %6 = vector.extract_strided_slice %4 {offsets = [0, 128], sizes = [64, 128], strides = [1, 1]} : vector<64x384xf32> to vector<64x128xf32>
    %7 = vector.extract_strided_slice %4 {offsets = [0, 256], sizes = [64, 128], strides = [1, 1]} : vector<64x384xf32> to vector<64x128xf32>
    %8 = arith.truncf %5 : vector<64x128xf32> to vector<64x128xbf16>
    %9 = arith.truncf %6 : vector<64x128xf32> to vector<64x128xbf16>
    %cst_4 = arith.constant dense<0.000000e+00> : vector<64x64xf32>
    %10 = tpu.matmul %8, %9, %cst_4 {dimension_numbers = #tpu.dot_dimension_numbers<[1], [1], [0], [0], [0, 0, 1, 0], [], []>} : vector<64x128xbf16>, vector<64x128xbf16>, vector<64x64xf32> -> vector<64x64xf32>
    %cst_5 = arith.constant dense<0xFF800000> : vector<64xf32>
    %11 = vector.multi_reduction <maximumf>, %10, %cst_5 [1] : vector<64x64xf32> to vector<64xf32>
    %12 = vector.shape_cast %11 : vector<64xf32> to vector<64x1xf32>
    %13 = vector.broadcast %12 : vector<64x1xf32> to vector<64x64xf32>
    %14 = arith.subf %10, %13 : vector<64x64xf32>
    %15 = math.exp %14 : vector<64x64xf32>
    %cst_6 = arith.constant dense<0.000000e+00> : vector<64xf32>
    %16 = vector.multi_reduction <add>, %15, %cst_6 [1] : vector<64x64xf32> to vector<64xf32>
    %17 = vector.shape_cast %16 : vector<64xf32> to vector<64x1xf32>
    %18 = tpu.reciprocal %17 {approx = true} : vector<64x1xf32> -> vector<64x1xf32>
    %19 = vector.broadcast %18 : vector<64x1xf32> to vector<64x64xf32>
    %20 = arith.mulf %15, %19 : vector<64x64xf32>
    %21 = arith.truncf %20 : vector<64x64xf32> to vector<64x64xbf16>
    %22 = arith.truncf %7 : vector<64x128xf32> to vector<64x128xbf16>
    %cst_7 = arith.constant dense<0.000000e+00> : vector<64x128xf32>
    %23 = tpu.matmul %21, %22, %cst_7 {dimension_numbers = #tpu.dot_dimension_numbers<[1], [0], [0], [1], [0, 0, 1, 1], [], []>} : vector<64x64xbf16>, vector<64x128xbf16>, vector<64x128xf32> -> vector<64x128xf32>
    %24 = arith.truncf %23 : vector<64x128xf32> to vector<64x128xbf16>
    %c0_8 = arith.constant 0 : index
    %c0_9 = arith.constant 0 : index
    %25 = vector.load %arg3[%c0_8, %c0_9] : memref<128x128xbf16, #tpu.memory_space<vmem>>, vector<128x128xbf16>
    %cst_10 = arith.constant dense<0.000000e+00> : vector<64x128xf32>
    %26 = tpu.matmul %24, %25, %cst_10 {dimension_numbers = #tpu.dot_dimension_numbers<[1], [0], [0], [1], [0, 0, 1, 1], [], []>} : vector<64x128xbf16>, vector<128x128xbf16>, vector<64x128xf32> -> vector<64x128xf32>
    %27 = arith.addf %1, %26 : vector<64x128xf32>
    %cst_11 = arith.constant dense<0.000000e+00> : vector<64xf32>
    %28 = vector.multi_reduction <add>, %27, %cst_11 [1] : vector<64x128xf32> to vector<64xf32>
    %29 = vector.shape_cast %28 : vector<64xf32> to vector<64x1xf32>
    %cst_12 = arith.constant 1.280000e+02 : f32
    %30 = vector.broadcast %cst_12 : f32 to vector<64x1xf32>
    %31 = arith.divf %29, %30 : vector<64x1xf32>
    %32 = vector.broadcast %31 : vector<64x1xf32> to vector<64x128xf32>
    %33 = arith.subf %27, %32 : vector<64x128xf32>
    %34 = arith.mulf %33, %33 : vector<64x128xf32>
    %cst_13 = arith.constant dense<0.000000e+00> : vector<64xf32>
    %35 = vector.multi_reduction <add>, %34, %cst_13 [1] : vector<64x128xf32> to vector<64xf32>
    %36 = vector.shape_cast %35 : vector<64xf32> to vector<64x1xf32>
    %cst_14 = arith.constant 1.280000e+02 : f32
    %37 = vector.broadcast %cst_14 : f32 to vector<64x1xf32>
    %38 = arith.divf %36, %37 : vector<64x1xf32>
    %cst_15 = arith.constant 9.99999974E-6 : f32
    %39 = vector.broadcast %cst_15 : f32 to vector<64x1xf32>
    %40 = arith.addf %38, %39 : vector<64x1xf32>
    %41 = math.rsqrt %40 : vector<64x1xf32>
    %42 = vector.broadcast %41 : vector<64x1xf32> to vector<64x128xf32>
    %43 = arith.mulf %33, %42 : vector<64x128xf32>
    %c0_16 = arith.constant 0 : index
    %c0_17 = arith.constant 0 : index
    %44 = vector.load %arg4[%c0_16, %c0_17] : memref<1x128xf32, #tpu.memory_space<vmem>>, vector<1x128xf32>
    %45 = vector.broadcast %44 : vector<1x128xf32> to vector<64x128xf32>
    %46 = arith.mulf %43, %45 : vector<64x128xf32>
    %c0_18 = arith.constant 0 : index
    %c0_19 = arith.constant 0 : index
    %47 = vector.load %arg5[%c0_18, %c0_19] : memref<1x128xf32, #tpu.memory_space<vmem>>, vector<1x128xf32>
    %48 = vector.broadcast %47 : vector<1x128xf32> to vector<64x128xf32>
    %49 = arith.addf %46, %48 : vector<64x128xf32>
    %c0_20 = arith.constant 0 : index
    %c0_21 = arith.constant 0 : index
    %c0_22 = arith.constant 0 : index
    %50 = vector.load %arg6[%c0_20, %c0_21, %c0_22] : memref<1x64x128xf32, #tpu.memory_space<vmem>>, vector<1x64x128xf32>
    %51 = vector.shape_cast %50 : vector<1x64x128xf32> to vector<64x128xf32>
    %52 = vector.shape_cast %49 : vector<64x128xf32> to vector<1x64x128xf32>
    tpu.vector_store %arg6[%c0_20, %c0_21, %c0_22], %52 {strides = array<i32>} : memref<1x64x128xf32, #tpu.memory_space<vmem>>, vector<1x64x128xf32>,
    return
  }
  func.func @transform_0(%arg0: i32) -> (i32, i32, i32) {
    %c0_i32 = arith.constant 0 : i32
    %c0_i32_0 = arith.constant 0 : i32
    %c0_i32_1 = arith.constant 0 : i32
    return %arg0, %c0_i32, %c0_i32_0 : i32, i32, i32
  }
  func.func @transform_1(%arg0: i32) -> (i32, i32) {
    %c0_i32 = arith.constant 0 : i32
    %c0_i32_0 = arith.constant 0 : i32
    %c0_i32_1 = arith.constant 0 : i32
    return %c0_i32, %c0_i32_0 : i32, i32
  }
  func.func @transform_2(%arg0: i32) -> (i32, i32) {
    %c0_i32 = arith.constant 0 : i32
    %c0_i32_0 = arith.constant 0 : i32
    %c0_i32_1 = arith.constant 0 : i32
    return %c0_i32, %c0_i32_0 : i32, i32
  }
  func.func @transform_3(%arg0: i32) -> (i32, i32) {
    %c0_i32 = arith.constant 0 : i32
    %c0_i32_0 = arith.constant 0 : i32
    %c0_i32_1 = arith.constant 0 : i32
    return %c0_i32, %c0_i32_0 : i32, i32
  }
  func.func @transform_4(%arg0: i32) -> (i32, i32) {
    %c0_i32 = arith.constant 0 : i32
    %c0_i32_0 = arith.constant 0 : i32
    %c0_i32_1 = arith.constant 0 : i32
    return %c0_i32, %c0_i32_0 : i32, i32
  }
  func.func @transform_5(%arg0: i32) -> (i32, i32, i32) {
    %c0_i32 = arith.constant 0 : i32
    %c0_i32_0 = arith.constant 0 : i32
    %c0_i32_1 = arith.constant 0 : i32
    return %arg0, %c0_i32, %c0_i32_0 : i32, i32, i32
  }
}

</mosaic_0001>

<bundles_post_ra>
// kernel: gcn_module_forward.1
= control target key start
LH: loop header
LB: loop body
LE: loop exit
PB: predicated region body
PF: predicated region fallthrough
CT: control target
= control target key end

     0   :  { %10 = vsyncpa [#allocation3], 0  ;;  %s2062_s0 = inlined_call_operand.hbm [shape: f32[2,64,128], index: 0, kind: input, shape index: {}]   ;;  %s2063_s1 = inlined_call_operand.hbm [shape: bf16[128,384], index: 1, kind: input, shape index: {}]   ;;  %s2064_s2 = inlined_call_operand.hbm [shape: bf16[128,128], index: 2, kind: input, shape index: {}]   ;;  %s2065_s3 = inlined_call_operand.vmem [shape: f32[1,128], index: 3, kind: input, shape index: {}]   ;;  %s2066_s4 = inlined_call_operand.vmem [shape: f32[1,128], index: 4, kind: input, shape index: {}]   ;;  %s2067_s5 = inlined_call_operand.hbm [shape: f32[2,64,128], index: 5, kind: output, shape index: {}]  }
   0x1   :  { %12 = vsyncpa [#allocation3 + $0x1], 0 }
   0x2   :  { %13 = vsyncpa [#allocation6], 0 }
   0x3   :  { %14 = vsyncpa [#allocation4], 0 }
   0x4   :  { %16 = vsyncpa [#allocation4 + $0x1], 0  ;;  %s1739_s18 = smov 0   ;;  %s1741_s19 = smov 0  }
   0x5   :  { %s1743_s20 = smov 0   ;;  %s1745_s21 = smov 0  }
   0x6 LB: > { %s1760_s22 = sadd.s32 4294967295, %s1694_s21   ;;  %s1204_s23 = sadd.s32 4294967294, %s1694_s21   ;;  %s1694_s21 = sphi %s1745_s21, %s2089_s21   ;;  %s1690_s20 = sphi %s1743_s20, %s2088_s20   ;;  %s1686_s19 = sphi %s1741_s19, %s2087_s19   ;;  %s1682_s18 = sphi %s1739_s18, %s2086_s18  }
   0x7   : > { %p42_p0 = scmp.ne.s32.totalorder %s1686_s19, %s1682_s18  ;;  %p2068_p1 = scmp.eq.s32.totalorder %s1760_s22, 0 }
   0x8   : > { %p156_p3 = scmp.eq.s32.totalorder %s1204_s23, 1  ;;  %p1205_p5 = scmp.ge.s32.totalorder %s1694_s21, 1 }
   0x9   : > { %p1769_p4 = por %p2068_p1, %p42_p0  ;;  %p163_p7 = scmp.lt.s32.totalorder %s1694_s21, 3 }
   0xa   : > { %p1774_p6 = por %p156_p3, %p42_p0  ;;  %s1696_s27 = smov [#allocation5]  }
   0xb   : > { %s2072_s24 = scalar_select %p1769_p4, 1, 0 }
   0xc   : > { %s2073_s25 = scalar_select %p1774_p6, 1, 0 }
   0xd   : > { %p1779_p8 = pnand %p1205_p5, %p163_p7  ;;  %s175_s28 = sshll.u32 %s1696_s27, 4  ;;  %s176_s28 = int_to_ptr.vmem [resolvable:$true] %s175_s28 }
   0xe   : > { %s1697_s30 = smov [#allocation7]   ;;  %s1557_s7 = scalar_lea.vmem %s176_s28, 3072 }
   0xf   : > { %s2074_s26 = scalar_select %p1779_p8, 1, 0 }
  0x10   : > { %p1394_p9 = pneg %p1779_p8  ;;  %s188_s6 = sshll.u32 %s1697_s30, 4  ;;  %s189_s6 = int_to_ptr.vmem [resolvable:$true] %s188_s6 }
  0x11   : > { %p1558_p13 = scmp.ne.s32.totalorder %s176_s28, %s1557_s7  ;;  %p1565_p5 = scmp.lt.s32.totalorder %s176_s28, %s176_s28 }
  0x12   : > { %p1788_p11 = pnand %p1394_p9, %p2068_p1  ;;  %p1566_p7 = scmp.lt.s32.totalorder %s1557_s7, %s1557_s7 }
  0x14   : > { %p1548_p12 = pneg %p1788_p11  ;;  %p1567_p10 = por %p1566_p7, %p1565_p5 }
  0x16   : > { %p1560_p0 = pnand %p1558_p13, %p1548_p12 }
  0x18   : > { %p1561_p3 = pneg %p1560_p0 }
  0x1a   : > { %p1568_p9 = pnand %p1567_p10, %p1561_p3 }
  0x1c   : > { %1571 = shalt.err (!%p1568_p9)
}
  0x1d   : > { %s1698_s8 = smov 192   ;;  %s1699_s9 = smov 12  }
  0x1e   : > { %1397 = dma.hbm_to_vmem [thread:$0]  (!%p1788_p11), %s2063_s1, 3072, %s176_s28, [#allocation6], %s1698_s8, %s1698_s8, %s1699_s9  }
  0x1f   : > { %s1583_s12 = scalar_lea.vmem %s189_s6, 1024  ;;  %p1591_p2 = scmp.lt.s32.totalorder %s189_s6, %s189_s6 }
  0x20   : > { %p1584_p1 = scmp.ne.s32.totalorder %s189_s6, %s1583_s12  ;;  %p1592_p6 = scmp.lt.s32.totalorder %s1583_s12, %s1583_s12 }
  0x22   : > { %p1586_p13 = pnand %p1584_p1, %p1548_p12  ;;  %p1593_p5 = por %p1592_p6, %p1591_p2 }
  0x24   : > { %p1587_p0 = pneg %p1586_p13 }
  0x26   : > { %p1594_p10 = pnand %p1593_p5, %p1587_p0 }
  0x28   : > { %1597 = shalt.err (!%p1594_p10)
}
  0x29   : > { %s1700_s13 = smov 64   ;;  %s1701_s14 = smov 4  }
  0x2a   : > { %1400 = dma.hbm_to_vmem [thread:$0]  (!%p1788_p11), %s2064_s2, 1024, %s189_s6, [#allocation6], %s1700_s13, %s1700_s13, %s1701_s14  }
  0x2b   : > { %s1811_s17 = sadd.s32 1, %s1694_s21   ;;  %s29_s27 = sadd.s32 1, %s1690_s20 }
  0x2c   : > { %s26_s23 = ssub.s32 %s1694_s21, %s1811_s17  ;;  %p36_p2 = scmp.ne.s32.totalorder %s1690_s20, %s1686_s19 }
  0x2d   : > { %p27_p1 = scmp.eq.s32.totalorder %s26_s23, 0  ;;  %p37_p6 = scmp.eq.s32.totalorder %s1694_s21, 0 }
  0x2e   : > { %p2076_p3 = scmp.eq.s32.totalorder %s1760_s22, 1  ;;  %p1411_p9 = scmp.lt.s32.totalorder %s1694_s21, 2 }
  0x2f   : > { %s1820_s28 = scalar_select %p27_p1, %s1690_s20, %s29_s27  }
  0x30   : > { %p38_p12 = por %p37_p6, %p36_p2  ;;  %p1824_p7 = por %p2076_p3, %p36_p2 }
  0x31   : > { %s208_s29 = sand.u32 1, %s1690_s20   ;;  %s1260_s6 = sshll.u32 %s1694_s21, 10 }
  0x32   : > { %s2077_s30 = scalar_select %p1824_p7, 1, 0 }
  0x33   : > { %s1209_s7 = sshll.u32 %s208_s29, 6  ;;  %s1834_s10 = scalar_lea.hbm %s2062_s0, %s1260_s6 }
  0x34   : > { %s212_s11 = scalar_lea.vmem [#allocation2], %s1209_s7  ;;  %p1838_p11 = pnand %p1411_p9, %p38_p12 }
  0x35   : > { %s219_s12 = sshll.u32 %s212_s11, 4  ;;  %s1842_s14 = scalar_lea.sflag [#allocation3], %s208_s29  ;;  %s1836_s12 = int_to_ptr.vmem [resolvable:$true] %s219_s12 }
  0x36   : > { %s1598_s15 = scalar_lea.hbm %s1834_s10, 1024  ;;  %p1600_p0 = pneg %p1838_p11 }
  0x37   : > { %p1599_p13 = scmp.ne.s32.totalorder %s1834_s10, %s1598_s15  ;;  %s1603_s27 = scalar_lea.hbm %s2062_s0, 2048 }
  0x38   : > { %p1604_p1 = scmp.lt.s32.totalorder %s1834_s10, %s2062_s0  ;;  %p1605_p2 = scmp.lt.s32.totalorder %s1603_s27, %s1598_s15 }
  0x39   : > { %p1601_p5 = pnand %p1600_p0, %p1599_p13 }
  0x3a   : > { %p1606_p6 = por %p1605_p2, %p1604_p1 }
  0x3b   : > { %p1602_p10 = pneg %p1601_p5 }
  0x3d   : > { %p1607_p12 = pnand %p1606_p6, %p1602_p10 }
  0x3f   : > { %1610 = shalt.err (!%p1607_p12)
}
  0x40   : > { %s1611_s29 = scalar_lea.vmem %s1836_s12, 1024  ;;  %s1702_s8 = smov [#allocation2]  }
  0x41   : > { %p1612_p3 = scmp.ne.s32.totalorder %s1836_s12, %s1611_s29  ;;  %s1616_s9 = sshll.u32 %s1702_s8, 4  ;;  %s1617_s9 = int_to_ptr.vmem [resolvable:$false] %s1616_s9 }
  0x42   : > { %s1618_s11 = scalar_lea.vmem %s1617_s9, 2048  ;;  %p1619_p5 = scmp.lt.s32.totalorder %s1836_s12, %s1617_s9 }
  0x43   : > { %p1614_p9 = pnand %p1612_p3, %p1600_p0  ;;  %p1620_p7 = scmp.lt.s32.totalorder %s1618_s11, %s1611_s29 }
  0x45   : > { %p1615_p13 = pneg %p1614_p9  ;;  %p1621_p4 = por %p1620_p7, %p1619_p5 }
  0x47   : > { %p1622_p8 = pnand %p1621_p4, %p1615_p13 }
  0x49   : > { %1625 = shalt.err (!%p1622_p8)
}
  0x4a   : > { %s1703_s15 = smov 128   ;;  %s1704_s16 = smov 8  }
  0x4b   : > { %1404 = dma.hbm_to_vmem [thread:$0]  (!%p1838_p11), %s1834_s10, 1024, %s1836_s12, %s1842_s14, %s1703_s15, %s1703_s15, %s1704_s16  }
  0x4c   : > { %p2079_p0 = scmp.ne.s32.totalorder %s2074_s26, 0 }
  0x4d   : > { %s1866_s23 = sand.u32 (!%p2079_p0), 1, %s1686_s19   ;;  %p2080_p4 = scmp.ne.s32.totalorder (!%p2079_p0), %s2072_s24, 0 }
  0x4e   : > { %231 = sbr.rel (%p2079_p0) target bundleno = 1630 (0x65e), region = 40  ;;  %s1213_s27 = sshll.u32 (!%p2079_p0), %s1866_s23, 6 }
  0x4f   : > { %s234_s7 = scalar_lea.sflag (!%p2079_p0), [#allocation3], %s1866_s23  ;;  %s1872_s6 = scalar_lea.vmem (!%p2079_p0), [#allocation2], %s1213_s27 }
  0x53   : > { %1669 = dma.done.wait (%p2080_p4), %s234_s7, 1024  }
  0x54   : > { %1671 = vsyncadd (%p2080_p4), %s234_s7, 4294966272  ;;  %p2081_p8 = scmp.eq.s32.totalorder %s1760_s22, 0 }
  0x56   : > { %1673 = dma.done.wait (%p2081_p8), [#allocation6], 4096   ;;  %p2082_p7 = pmov %p2081_p8 }
  0x57   : > { %v1705_v0 = vmov 0   ;;  %v1458_v1 = vld [vmem:[#allocation5 + $0xac] ss:$12 sps:$4 sm:$0xff]   ;;  %v1460_v2 = vld [vmem:[#allocation5 + $0xa8] ss:$12 sps:$4 sm:$0xff]   ;;  %v1883_v8 = vld [vmem:[%s1872_s6] sm:$0xff] }
  0x58   : > { %1675 = vsyncadd (%p2082_p7), [#allocation6], 4294963200  ;;  %477 = vmatprep.mubr.bf16.mxu0 %v1705_v0  ;;  %445 = vmatprep.subr.bf16.mxu0 %v1458_v1  ;;  %v1461_v3 = vld [vmem:[#allocation5 + $0x94] ss:$12 sps:$4 sm:$0xff]   ;;  %v1463_v4 = vld [vmem:[#allocation5 + $0x90] ss:$12 sps:$4 sm:$0xff]  }
  0x59   : > { %446 = vmatpush1.bf16.msra.mxu0 %v1460_v2  ;;  %v1464_v5 = vld [vmem:[#allocation5 + $0x7c] ss:$12 sps:$4 sm:$0xff]   ;;  %v1466_v6 = vld [vmem:[#allocation5 + $0x78] ss:$12 sps:$4 sm:$0xff]   ;;  %v1469_v9 = vld [vmem:[#allocation5 + $0x60] ss:$12 sps:$4 sm:$0xff]  }
  0x5a   : > { %447 = vmatprep.subr.bf16.mxu0 %v1461_v3  ;;  %v1467_v7 = vld [vmem:[#allocation5 + $0x64] ss:$12 sps:$4 sm:$0xff]   ;;  %v1886_v10 = vld [vmem:[%s1872_s6 + $0x8] sm:$0xff]  ;;  %v1473_v14 = vld [vmem:[#allocation5 + $0x34] ss:$12 sps:$4 sm:$0xff]   ;;  %vm656_vm0 = vcmask 523264  }
  0x5b   : > { %v1470_v11 = vld [vmem:[#allocation5 + $0x4c] ss:$12 sps:$4 sm:$0xff]   ;;  %v281_v12 = vpack.c.bf16 %v1886_v10, %v1883_v8  ;;  %v1472_v13 = vld [vmem:[#allocation5 + $0x48] ss:$12 sps:$4 sm:$0xff]   ;;  %v1475_v15 = vld [vmem:[#allocation5 + $0x30] ss:$12 sps:$4 sm:$0xff]  }
  0x5c   : > { %v1476_v16 = vld [vmem:[#allocation5 + $0x1c] ss:$12 sps:$4 sm:$0xff]   ;;  %v1478_v17 = vld [vmem:[#allocation5 + $0x18] ss:$12 sps:$4 sm:$0xff]   ;;  %v1481_v19 = vld [vmem:[#allocation5] ss:$12 sps:$4 sm:$0xff]  }
  0x5d   : > { %448 = vmatpush1.bf16.msra.mxu0 %v1463_v4  ;;  %1318 = vmatprep.mubr.bf16.mxu1 %v281_v12  ;;  %v1479_v18 = vld [vmem:[#allocation5 + $0x4] ss:$12 sps:$4 sm:$0xff]   ;;  %v1894_v21 = vld [vmem:[%s1872_s6 + $0x18] sm:$0xff]  ;;  %v1905_v24 = vld [vmem:[%s1872_s6 + $0x28] sm:$0xff]  ;;  %s1997_s13 = scalar_lea.vmem [#allocation8], %s1213_s27  ;;  %s1261_s14 = sshll.u32 %s1760_s22, 10 }
  0x5e   : > { %449 = vmatprep.subr.bf16.mxu0 %v1464_v5  ;;  %v1891_v20 = vld [vmem:[%s1872_s6 + $0x10] sm:$0xff]  ;;  %v1902_v23 = vld [vmem:[%s1872_s6 + $0x20] sm:$0xff]  ;;  %v1916_v27 = vld [vmem:[%s1872_s6 + $0x38] sm:$0xff]  ;;  %s1112_s29 = sshll.u32 %s1997_s13, 4  ;;  %s2016_s11 = scalar_lea.hbm %s2067_s5, %s1261_s14  ;;  %s2018_s29 = int_to_ptr.vmem [resolvable:$true] %s1112_s29 }
  0x5f   : > { %v1898_v22 = vpack.c.bf16 %v1894_v21, %v1891_v20  ;;  %v1909_v25 = vpack.c.bf16 %v1905_v24, %v1902_v23  ;;  %v1913_v26 = vld [vmem:[%s1872_s6 + $0x30] sm:$0xff]  ;;  %v1483_v54 = vld [vmem:[#allocation5 + $0x98] ss:$12 sps:$4 sm:$0xff]   ;;  %v1484_v55 = vld [vmem:[#allocation5 + $0x80] ss:$12 sps:$4 sm:$0xff]   ;;  %s1099_s15 = scalar_lea.sflag [#allocation4], %s1866_s23 }
  0x60   : > { %v1920_v28 = vpack.c.bf16 %v1916_v27, %v1913_v26  ;;  %v1482_v53 = vld [vmem:[#allocation5 + $0xb0] ss:$12 sps:$4 sm:$0xff]   ;;  %v1485_v56 = vld [vmem:[#allocation5 + $0x68] ss:$12 sps:$4 sm:$0xff]   ;;  %v1487_v58 = vld [vmem:[#allocation5 + $0x38] ss:$12 sps:$4 sm:$0xff]  }
  0x61   : > { %450 = vmatpush1.bf16.msra.mxu0 %v1466_v6  ;;  %1302 = vmatprep.subr.bf16.mxu1 %v1482_v53  ;;  %v1486_v57 = vld [vmem:[#allocation5 + $0x50] ss:$12 sps:$4 sm:$0xff]   ;;  %v1488_v59 = vld [vmem:[#allocation5 + $0x20] ss:$12 sps:$4 sm:$0xff]   ;;  %v1489_v60 = vld [vmem:[#allocation5 + $0x8] ss:$12 sps:$4 sm:$0xff]  }
  0x62   : > { %451 = vmatprep.subr.bf16.mxu0 %v1467_v7  ;;  %1303 = vmatpush3.bf16.msra.mxu1 %v1482_v53  ;;  %s1626_s16 = scalar_lea.vmem %s2018_s29, 1024  ;;  %p2083_p10 = scmp.ne.s32.totalorder %s2077_s30, 0 }
  0x63   : > { %1304 = vmatprep.subr.bf16.mxu1 %v1483_v54  ;;  %p1627_p11 = scmp.ne.s32.totalorder %s2018_s29, %s1626_s16  ;;  %s1706_s22 = smov [#allocation8]  }
  0x64   : > { %s1630_s27 = sshll.u32 %s1706_s22, 4  ;;  %s1631_s27 = int_to_ptr.vmem [resolvable:$false] %s1630_s27 }
  0x65   : > { %452 = vmatpush1.bf16.msra.mxu0 %v1469_v9  ;;  %p1628_p1 = pnand %p1627_p11, %p2083_p10  ;;  %s1632_s7 = scalar_lea.vmem %s1631_s27, 2048 }
  0x66   : > { %453 = vmatprep.subr.bf16.mxu0 %v1470_v11  ;;  %1305 = vmatpush3.bf16.msra.mxu1 %v1483_v54  ;;  %p1633_p6 = scmp.lt.s32.totalorder %s2018_s29, %s1631_s27  ;;  %p1634_p12 = scmp.lt.s32.totalorder %s1632_s7, %s1626_s16 }
  0x67   : > { %1306 = vmatprep.subr.bf16.mxu1 %v1484_v55  ;;  %p1629_p2 = pneg %p1628_p1 }
  0x68   : > { %p1635_p3 = por %p1634_p12, %p1633_p6 }
  0x69   : > { %454 = vmatpush1.bf16.msra.mxu0 %v1472_v13 }
  0x6a   : > { %455 = vmatprep.subr.bf16.mxu0 %v1473_v14  ;;  %1307 = vmatpush3.bf16.msra.mxu1 %v1484_v55  ;;  %p1636_p9 = pnand %p1635_p3, %p1629_p2 }
  0x6b   : > { %1308 = vmatprep.subr.bf16.mxu1 %v1485_v56 }
  0x6d   : > { %456 = vmatpush1.bf16.msra.mxu0 %v1475_v15 }
  0x6e   : > { %457 = vmatprep.subr.bf16.mxu0 %v1476_v16  ;;  %1309 = vmatpush3.bf16.msra.mxu1 %v1485_v56 }
  0x6f   : > { %1310 = vmatprep.subr.bf16.mxu1 %v1486_v57 }
  0x71   : > { %458 = vmatpush1.bf16.msra.mxu0 %v1478_v17 }
  0x72   : > { %459 = vmatprep.subr.bf16.mxu0 %v1479_v18  ;;  %1311 = vmatpush3.bf16.msra.mxu1 %v1486_v57 }
  0x73   : > { %1312 = vmatprep.subr.bf16.mxu1 %v1487_v58 }
  0x75   : > { %460 = vmatpush1.bf16.msra.mxu0 %v1481_v19 }
  0x76   : > { %1313 = vmatpush3.bf16.msra.mxu1 %v1487_v58 }
  0x77   : > { %1314 = vmatprep.subr.bf16.mxu1 %v1488_v59 }
  0x78   : > { %478 = vmatmul.mubr.bf16.vlgmr.msra.gmra.mxu0 %v281_v12 }
  0x79   : > { %487 = vmatprep.mubr.bf16.mxu0 %v1705_v0 }
  0x7a   : > { %1315 = vmatpush3.bf16.msra.mxu1 %v1488_v59 }
  0x7b   : > { %1316 = vmatprep.subr.bf16.mxu1 %v1489_v60 }
  0x7e   : > { %1317 = vmatpush3.bf16.msra.mxu1 %v1489_v60 }
  0x80   : > { %488 = vmatmul.mubr.bf16.gmra.mxu0 %v1898_v22 }
  0x81   : > { %497 = vmatprep.mubr.bf16.mxu0 %v1705_v0  ;;  %1319 = vmatmul.mubr.bf16.vlgmr.msra.gmra.mxu1 %v1898_v22 }
  0x82   : > { %1322 = vmatprep.mubr.bf16.mxu1 %v1909_v25 }
  0x88   : > { %498 = vmatmul.mubr.bf16.gmra.mxu0 %v1909_v25 }
  0x89   : > { %507 = vmatprep.mubr.bf16.mxu0 %v1705_v0  ;;  %1323 = vmatmul.mubr.bf16.gmra.mxu1 %v1920_v28 }
  0x90   : > { %508 = vmatmul.mubr.bf16.gmra.mxu0 %v1920_v28 }
 0x138   : > { %v479_v29 = vpop.f32.mrf.mxu0 }
 0x13a   : > { %v481_v30 = vpop.f32.mrf.mxu0 }
 0x13c   : > { %v483_v31 = vpop.f32.mrf.mxu0 }
 0x13d   : > { %v583_v32 = vpack.c.bf16 %v483_v31, %v479_v29 }
 0x13e   : > { %v485_v33 = vpop.f32.mrf.mxu0 }
 0x13f   : > { %1334 = vmatprep.mubr.bf16.mxu0 %v583_v32  ;;  %v587_v49 = vpack.c.bf16 %v485_v33, %v481_v30 }
 0x140   : > { %v489_v34 = vpop.f32.mrf.mxu0 }
 0x141   : > { %v1320_v15 = vpop.f32.mrf.mxu1 }
 0x142   : > { %v491_v35 = vpop.f32.mrf.mxu0 }
 0x143   : > { %v552_v16 = vpop.f32.mrf.mxu1 }
 0x144   : > { %v493_v36 = vpop.f32.mrf.mxu0 }
 0x145   : > { %v584_v50 = vpack.c.bf16 %v493_v36, %v489_v34  ;;  %v1321_v17 = vpop.f32.mrf.mxu1 }
 0x146   : > { %v495_v37 = vpop.f32.mrf.mxu0  ;;  %v750_v31 = vpack.c.bf16 %v1321_v17, %v1320_v15 }
 0x147   : > { %v588_v48 = vpack.c.bf16 %v495_v37, %v491_v35  ;;  %v555_v18 = vpop.f32.mrf.mxu1 }
 0x148   : > { %v499_v38 = vpop.f32.mrf.mxu0  ;;  %v749_v33 = vpack.c.bf16 %v555_v18, %v552_v16 }
 0x149   : > { %v1324_v19 = vpop.f32.mrf.mxu1 }
 0x14a   : > { %v501_v39 = vpop.f32.mrf.mxu0 }
 0x14b   : > { %v568_v22 = vpop.f32.mrf.mxu1 }
 0x14c   : > { %v503_v40 = vpop.f32.mrf.mxu0 }
 0x14d   : > { %v585_v51 = vpack.c.bf16 %v503_v40, %v499_v38  ;;  %v1325_v25 = vpop.f32.mrf.mxu1 }
 0x14e   : > { %v505_v41 = vpop.f32.mrf.mxu0  ;;  %v752_v28 = vpack.c.bf16 %v1325_v25, %v1324_v19 }
 0x14f   : > { %v589_v47 = vpack.c.bf16 %v505_v41, %v501_v39  ;;  %v571_v29 = vpop.f32.mrf.mxu1 }
 0x150   : > { %v509_v42 = vpop.f32.mrf.mxu0  ;;  %1342 = vmatprep.subr.bf16.mxu1 %v752_v28  ;;  %v751_v30 = vpack.c.bf16 %v571_v29, %v568_v22 }
 0x151   : > { %1343 = vmatpush3.bf16.msra.mxu1 %v752_v28 }
 0x152   : > { %v511_v43 = vpop.f32.mrf.mxu0  ;;  %1344 = vmatprep.subr.bf16.mxu1 %v751_v30 }
 0x154   : > { %v513_v44 = vpop.f32.mrf.mxu0 }
 0x155   : > { %v586_v52 = vpack.c.bf16 %v513_v44, %v509_v42  ;;  %1345 = vmatpush3.bf16.msra.mxu1 %v751_v30 }
 0x156   : > { %v515_v45 = vpop.f32.mrf.mxu0  ;;  %1346 = vmatprep.subr.bf16.mxu1 %v750_v31 }
 0x157   : > { %v590_v46 = vpack.c.bf16 %v515_v45, %v511_v43 }
 0x159   : > { %1326 = vmatprep.subr.bf16.mxu0 %v590_v46  ;;  %1347 = vmatpush3.bf16.msra.mxu1 %v750_v31 }
 0x15a   : > { %1327 = vmatpush3.bf16.xpose.msra.mxu0 %v590_v46  ;;  %1348 = vmatprep.subr.bf16.mxu1 %v749_v33 }
 0x15b   : > { %1328 = vmatprep.subr.bf16.mxu0 %v589_v47 }
 0x15d   : > { %1349 = vmatpush3.bf16.msra.mxu1 %v749_v33 }
 0x162   : > { %1329 = vmatpush3.bf16.xpose.msra.mxu0 %v589_v47 }
 0x163   : > { %1330 = vmatprep.subr.bf16.mxu0 %v588_v48 }
 0x16a   : > { %1331 = vmatpush3.bf16.xpose.msra.mxu0 %v588_v48 }
 0x16b   : > { %1332 = vmatprep.subr.bf16.mxu0 %v587_v49 }
 0x172   : > { %1333 = vmatpush3.bf16.xpose.msra.mxu0 %v587_v49 }
 0x179   : > { %1335 = vmatmul.mubr.bf16.vlgmr.msra.gmra.mxu0 %v584_v50 }
 0x17a   : > { %1338 = vmatprep.mubr.bf16.mxu0 %v585_v51 }
 0x181   : > { %1339 = vmatmul.mubr.bf16.gmra.mxu0 %v586_v52 }
 0x239   : > { %v1336_v61 = vpop.f32.mrf.mxu0 }
 0x23a   : > { %v663_v62 = vsel %vm656_vm0, %v1336_v61, -inf }
 0x23b   : > { %664 = vmax.xlane.f32.xlu1 %v663_v62  ;;  %v625_v63 = vpop.f32.mrf.mxu0 }
 0x23c   : > { %v657_v0 = vsel %vm656_vm0, %v625_v63, -inf }
 0x23d   : > { %658 = vmax.xlane.f32.xlu0 %v657_v0  ;;  %v1337_v1 = vpop.f32.mrf.mxu0 }
 0x23e   : > { %v666_v2 = vsel %vm656_vm0, %v1337_v1, -inf }
 0x23f   : > { %667 = vmax.xlane.f32.xlu1 %v666_v2  ;;  %v628_v3 = vpop.f32.mrf.mxu0 }
 0x240   : > { %v660_v4 = vsel %vm656_vm0, %v628_v3, -inf }
 0x241   : > { %661 = vmax.xlane.f32.xlu0 %v660_v4  ;;  %v1340_v5 = vpop.f32.mrf.mxu0 }
 0x242   : > { %v675_v12 = vsel %vm656_vm0, %v1340_v5, -inf }
 0x243   : > { %v641_v6 = vpop.f32.mrf.mxu0 }
 0x244   : > { %v669_v7 = vsel %vm656_vm0, %v641_v6, -inf }
 0x245   : > { %670 = vmax.xlane.f32.xlu0 %v669_v7  ;;  %v1341_v9 = vpop.f32.mrf.mxu0 }
 0x246   : > { %v678_v14 = vsel %vm656_vm0, %v1341_v9, -inf }
 0x247   : > { %v644_v11 = vpop.f32.mrf.mxu0 }
 0x248   : > { %v672_v13 = vsel %vm656_vm0, %v644_v11, -inf }
 0x249   : > { %676 = vmax.xlane.f32.xlu0 %v675_v12  ;;  %673 = vmax.xlane.f32.xlu1 %v672_v13 }
 0x24d   : > { %679 = vmax.xlane.f32.xlu1 %v678_v14 }
 0x2c4   : > { %v665_v32 = vpop.xlane.xlu1 %664 }
 0x2c5   : > { %v683_v34 = vsub.f32 %v1336_v61, %v665_v32 }
 0x2c6   : > { %v659_v35 = vpop.xlane.xlu0 %658 }
 0x2c7   : > { %v681_v36 = vsub.f32 %v625_v63, %v659_v35  ;;  %v693_v38 = vmul.f32 1.442695, %v683_v34 }
 0x2c8   : > { %v668_v37 = vpop.xlane.xlu1 %667 }
 0x2c9   : > { %v689_v39 = vmul.f32 1.442695, %v681_v36  ;;  %v684_v40 = vsub.f32 %v1337_v1, %v668_v37  ;;  %v1491_v37 = vld [vmem:[#allocation7 + $0x30] sm:$0xff]  }
 0x2ca   : > { %v662_v41 = vpop.xlane.xlu0 %661 }
 0x2cb   : > { %1498 = vpow2.f32 %v689_v39  ;;  %v682_v42 = vsub.f32 %v628_v3, %v662_v41  ;;  %v695_v43 = vmul.f32 1.442695, %v684_v40 }
 0x2cc   : > { %1500 = vpow2.f32 %v693_v38 }
 0x2cd   : > { %v691_v44 = vmul.f32 1.442695, %v682_v42 }
 0x2ce   : > { %v671_v45 = vpop.xlane.xlu0 %670 }
 0x2cf   : > { %1502 = vpow2.f32 %v691_v44  ;;  %v685_v46 = vsub.f32 %v641_v6, %v671_v45 }
 0x2d0   : > { %1504 = vpow2.f32 %v695_v43  ;;  %v1492_v43 = vld [vmem:[#allocation7 + $0x28] sm:$0xff]  }
 0x2d1   : > { %v697_v47 = vmul.f32 1.442695, %v685_v46 }
 0x2d2   : > { %v677_v48 = vpop.xlane.xlu0 %676  ;;  %v674_v49 = vpop.xlane.xlu1 %673 }
 0x2d3   : > { %1506 = vpow2.f32 %v697_v47  ;;  %v687_v50 = vsub.f32 %v1340_v5, %v677_v48  ;;  %v686_v51 = vsub.f32 %v644_v11, %v674_v49  ;;  %v1490_v11 = vld [vmem:[#allocation7 + $0x38] sm:$0xff]   ;;  %v1493_v48 = vld [vmem:[#allocation7 + $0x20] sm:$0xff]  }
 0x2d4   : > { %1358 = vmatprep.subr.bf16.mxu1 %v1490_v11  ;;  %v1494_v49 = vld [vmem:[#allocation7 + $0x18] sm:$0xff]  }
 0x2d5   : > { %v701_v52 = vmul.f32 1.442695, %v687_v50  ;;  %v699_v53 = vmul.f32 1.442695, %v686_v51  ;;  %v1495_v50 = vld [vmem:[#allocation7 + $0x10] sm:$0xff]   ;;  %v1496_v51 = vld [vmem:[#allocation7 + $0x8] sm:$0xff]  }
 0x2d6   : > { %v680_v54 = vpop.xlane.xlu1 %679 }
 0x2d7   : > { %1508 = vpow2.f32 %v701_v52  ;;  %v688_v55 = vsub.f32 %v1341_v9, %v680_v54  ;;  %v1497_v52 = vld [vmem:[#allocation7] sm:$0xff]  }
 0x2d8   : > { %v1499_v56 = vpop.eup %1498  ;;  %1510 = vpow2.f32 %v699_v53 }
 0x2d9   : > { %v703_v57 = vmul.f32 1.442695, %v688_v55  ;;  %v705_v58 = vsel %vm656_vm0, %v1499_v56, 0.0  ;;  %v1501_v59 = vpop.eup %1500 }
 0x2da   : > { %706 = vadd.xlane.f32.xlu0 %v705_v58  ;;  %v711_v61 = vsel %vm656_vm0, %v1501_v59, 0.0 }
 0x2db   : > { %1512 = vpow2.f32 %v703_v57 }
 0x2dc   : > { %v1503_v60 = vpop.eup %1502 }
 0x2dd   : > { %v708_v62 = vsel %vm656_vm0, %v1503_v60, 0.0  ;;  %v1505_v63 = vpop.eup %1504 }
 0x2de   : > { %712 = vadd.xlane.f32.xlu0 %v711_v61  ;;  %709 = vadd.xlane.f32.xlu1 %v708_v62  ;;  %v714_v2 = vsel %vm656_vm0, %v1505_v63, 0.0 }
 0x2e0   : > { %v1507_v0 = vpop.eup %1506 }
 0x2e1   : > { %v717_v1 = vsel %vm656_vm0, %v1507_v0, 0.0 }
 0x2e2   : > { %718 = vadd.xlane.f32.xlu0 %v717_v1  ;;  %715 = vadd.xlane.f32.xlu1 %v714_v2 }
 0x2e4   : > { %v1509_v3 = vpop.eup %1508 }
 0x2e5   : > { %v1511_v4 = vpop.eup %1510  ;;  %v723_v5 = vsel %vm656_vm0, %v1509_v3, 0.0 }
 0x2e6   : > { %724 = vadd.xlane.f32.xlu0 %v723_v5  ;;  %v720_v6 = vsel %vm656_vm0, %v1511_v4, 0.0 }
 0x2e7   : > { %721 = vadd.xlane.f32.xlu1 %v720_v6 }
 0x2e8   : > { %v1513_v7 = vpop.eup %1512 }
 0x2e9   : > { %v726_v9 = vsel %vm656_vm0, %v1513_v7, 0.0 }
 0x2eb   : > { %727 = vadd.xlane.f32.xlu1 %v726_v9 }
 0x363   : > { %v707_v12 = vpop.xlane.xlu0 %706 }
 0x364   : > { %1514 = vrcp.f32 %v707_v12 }
 0x367   : > { %v713_v13 = vpop.xlane.xlu0 %712  ;;  %v710_v14 = vpop.xlane.xlu1 %709 }
 0x368   : > { %1516 = vrcp.f32 %v710_v14 }
 0x369   : > { %1518 = vrcp.f32 %v713_v13 }
 0x36b   : > { %v719_v15 = vpop.xlane.xlu0 %718  ;;  %v716_v16 = vpop.xlane.xlu1 %715 }
 0x36c   : > { %1520 = vrcp.f32 %v716_v16 }
 0x36d   : > { %1522 = vrcp.f32 %v719_v15 }
 0x36f   : > { %v725_v17 = vpop.xlane.xlu0 %724 }
 0x370   : > { %v722_v18 = vpop.xlane.xlu1 %721 }
 0x371   : > { %1524 = vrcp.f32 %v722_v18  ;;  %v1515_v19 = vpop.eup %1514 }
 0x372   : > { %1526 = vrcp.f32 %v725_v17  ;;  %v737_v28 = vmul.f32 %v1515_v19, %v1499_v56 }
 0x374   : > { %v728_v22 = vpop.xlane.xlu1 %727 }
 0x375   : > { %1528 = vrcp.f32 %v728_v22  ;;  %v1517_v25 = vpop.eup %1516 }
 0x376   : > { %v738_v29 = vmul.f32 %v1517_v25, %v1503_v60  ;;  %v1519_v30 = vpop.eup %1518 }
 0x377   : > { %v739_v33 = vmul.f32 %v1519_v30, %v1501_v59 }
 0x378   : > { %v745_v31 = vpack.c.bf16 %v738_v29, %v737_v28 }
 0x379   : > { %v1521_v32 = vpop.eup %1520 }
 0x37a   : > { %v740_v34 = vmul.f32 %v1521_v32, %v1505_v63  ;;  %1350 = vmatprep.mubr.msk.bf16.mxu1 %vm656_vm0, %v745_v31  ;;  %v1523_v35 = vpop.eup %1522 }
 0x37b   : > { %v741_v39 = vmul.f32 %v1523_v35, %v1507_v0 }
 0x37c   : > { %v746_v36 = vpack.c.bf16 %v740_v34, %v739_v33 }
 0x37e   : > { %v1525_v38 = vpop.eup %1524  ;;  %1351 = vmatmul.mubr.msk.bf16.vlgmr.msra.gmra.mxu1 %vm656_vm0, %v746_v36 }
 0x37f   : > { %v742_v40 = vmul.f32 %v1525_v38, %v1511_v4  ;;  %v1527_v41 = vpop.eup %1526  ;;  %1359 = vmatpush3.bf16.msra.mxu1 %v1490_v11 }
 0x380   : > { %1360 = vmatprep.subr.bf16.mxu1 %v1491_v37  ;;  %v743_v45 = vmul.f32 %v1527_v41, %v1509_v3 }
 0x381   : > { %v747_v42 = vpack.c.bf16 %v742_v40, %v741_v39 }
 0x382   : > { %v1529_v44 = vpop.eup %1528 }
 0x383   : > { %1354 = vmatprep.mubr.msk.bf16.mxu1 %vm656_vm0, %v747_v42  ;;  %v744_v46 = vmul.f32 %v1529_v44, %v1513_v7  ;;  %1361 = vmatpush3.bf16.msra.mxu1 %v1491_v37 }
 0x384   : > { %1362 = vmatprep.subr.bf16.mxu1 %v1492_v43 }
 0x385   : > { %v748_v47 = vpack.c.bf16 %v744_v46, %v743_v45 }
 0x387   : > { %1355 = vmatmul.mubr.msk.bf16.gmra.mxu1 %vm656_vm0, %v748_v47 }
 0x388   : > { %1363 = vmatpush3.bf16.msra.mxu1 %v1492_v43 }
 0x389   : > { %1364 = vmatprep.subr.bf16.mxu1 %v1493_v48 }
 0x38c   : > { %1365 = vmatpush3.bf16.msra.mxu1 %v1493_v48 }
 0x38d   : > { %1366 = vmatprep.subr.bf16.mxu1 %v1494_v49 }
 0x390   : > { %1367 = vmatpush3.bf16.msra.mxu1 %v1494_v49 }
 0x391   : > { %1368 = vmatprep.subr.bf16.mxu1 %v1495_v50 }
 0x394   : > { %1369 = vmatpush3.bf16.msra.mxu1 %v1495_v50 }
 0x395   : > { %1370 = vmatprep.subr.bf16.mxu1 %v1496_v51 }
 0x398   : > { %1371 = vmatpush3.bf16.msra.mxu1 %v1496_v51 }
 0x399   : > { %1372 = vmatprep.subr.bf16.mxu1 %v1497_v52 }
 0x39c   : > { %1373 = vmatpush3.bf16.msra.mxu1 %v1497_v52 }
 0x43e   : > { %v1352_v53 = vpop.f32.mrf.mxu1 }
 0x440   : > { %v799_v54 = vpop.f32.mrf.mxu1 }
 0x442   : > { %v1353_v55 = vpop.f32.mrf.mxu1 }
 0x443   : > { %v831_v58 = vpack.c.bf16 %v1353_v55, %v1352_v53 }
 0x444   : > { %v802_v56 = vpop.f32.mrf.mxu1 }
 0x445   : > { %v830_v57 = vpack.c.bf16 %v802_v56, %v799_v54 }
 0x447   : > { %v1356_v59 = vpop.f32.mrf.mxu1  ;;  %1374 = vmatprep.mubr.bf16.mxu1 %v830_v57 }
 0x448   : > { %1375 = vmatmul.mubr.bf16.vlgmr.msra.gmra.mxu1 %v831_v58 }
 0x449   : > { %v815_v60 = vpop.f32.mrf.mxu1 }
 0x44b   : > { %v1357_v61 = vpop.f32.mrf.mxu1 }
 0x44c   : > { %v833_v0 = vpack.c.bf16 %v1357_v61, %v1356_v59 }
 0x44d   : > { %v818_v62 = vpop.f32.mrf.mxu1 }
 0x44e   : > { %v832_v63 = vpack.c.bf16 %v818_v62, %v815_v60 }
 0x450   : > { %1378 = vmatprep.mubr.bf16.mxu1 %v832_v63 }
 0x451   : > { %1379 = vmatmul.mubr.bf16.gmra.mxu1 %v833_v0 }
 0x508   : > { %v1376_v1 = vpop.f32.mrf.mxu1 }
 0x509   : > { %v965_v2 = vadd.f32 %v1376_v1, %v1891_v20 }
 0x50a   : > { %v932_v3 = vpop.f32.mrf.mxu1 }
 0x50b   : > { %975 = vadd.xlane.f32.xlu0 %v965_v2  ;;  %v963_v5 = vadd.f32 %v932_v3, %v1883_v8 }
 0x50c   : > { %v1377_v4 = vpop.f32.mrf.mxu1 }
 0x50d   : > { %v966_v6 = vadd.f32 %v1377_v4, %v1894_v21 }
 0x50e   : > { %v935_v7 = vpop.f32.mrf.mxu1 }
 0x50f   : > { %971 = vadd.xlane.f32.xlu0 %v963_v5  ;;  %977 = vadd.xlane.f32.xlu1 %v966_v6  ;;  %v964_v11 = vadd.f32 %v935_v7, %v1886_v10  ;;  %v1253_v7 = vld [vmem:[%s2065_s3] ss:$0 sm:$0xff] }
 0x511   : > { %v1380_v9 = vpop.f32.mrf.mxu1 }
 0x512   : > { %v969_v15 = vadd.f32 %v1380_v9, %v1913_v26 }
 0x513   : > { %v948_v12 = vpop.f32.mrf.mxu1  ;;  %973 = vadd.xlane.f32.xlu1 %v964_v11 }
 0x514   : > { %v967_v13 = vadd.f32 %v948_v12, %v1902_v23 }
 0x515   : > { %v1381_v14 = vpop.f32.mrf.mxu1 }
 0x516   : > { %979 = vadd.xlane.f32.xlu0 %v967_v13  ;;  %v970_v8 = vadd.f32 %v1381_v14, %v1916_v27 }
 0x517   : > { %v951_v20 = vpop.f32.mrf.mxu1 }
 0x518   : > { %v968_v16 = vadd.f32 %v951_v20, %v1905_v24 }
 0x51a   : > { %983 = vadd.xlane.f32.xlu0 %v969_v15  ;;  %981 = vadd.xlane.f32.xlu1 %v968_v16 }
 0x51e   : > { %985 = vadd.xlane.f32.xlu1 %v970_v8 }
 0x594   : > { %v976_v21 = vpop.xlane.xlu0 %975 }
 0x595   : > { %v990_v17 = vmul.f32 0.0078125, %v976_v21 }
 0x597   : > { %v1954_v18 = vsub.f32 %v965_v2, %v990_v17 }
 0x598   : > { %v972_v10 = vpop.xlane.xlu0 %971  ;;  %v978_v19 = vpop.xlane.xlu1 %977 }
 0x599   : > { %v988_v23 = vmul.f32 0.0078125, %v972_v10  ;;  %v991_v22 = vmul.f32 0.0078125, %v978_v19  ;;  %v1006_v25 = vmul.f32 %v1954_v18, %v1954_v18 }
 0x59b   : > { %v1958_v28 = vsub.f32 %v963_v5, %v988_v23  ;;  %v1960_v26 = vsub.f32 %v966_v6, %v991_v22  ;;  %1016 = vadd.xlane.f32.xlu0 %v1006_v25 }
 0x59c   : > { %v974_v24 = vpop.xlane.xlu1 %973 }
 0x59d   : > { %v989_v29 = vmul.f32 0.0078125, %v974_v24  ;;  %v1004_v27 = vmul.f32 %v1958_v28, %v1958_v28  ;;  %v1007_v30 = vmul.f32 %v1960_v26, %v1960_v26 }
 0x59f   : > { %v980_v31 = vpop.xlane.xlu0 %979  ;;  %v1966_v32 = vsub.f32 %v964_v11, %v989_v29  ;;  %1012 = vadd.xlane.f32.xlu0 %v1004_v27  ;;  %1018 = vadd.xlane.f32.xlu1 %v1007_v30 }
 0x5a0   : > { %v992_v33 = vmul.f32 0.0078125, %v980_v31 }
 0x5a1   : > { %v1005_v35 = vmul.f32 %v1966_v32, %v1966_v32 }
 0x5a2   : > { %v1968_v34 = vsub.f32 %v967_v13, %v992_v33  ;;  %v1254_v13 = vld [vmem:[%s2066_s4] ss:$0 sm:$0xff] }
 0x5a3   : > { %v984_v36 = vpop.xlane.xlu0 %983  ;;  %v982_v37 = vpop.xlane.xlu1 %981  ;;  %1014 = vadd.xlane.f32.xlu1 %v1005_v35 }
 0x5a4   : > { %v994_v38 = vmul.f32 0.0078125, %v984_v36  ;;  %v993_v39 = vmul.f32 0.0078125, %v982_v37  ;;  %v1008_v40 = vmul.f32 %v1968_v34, %v1968_v34 }
 0x5a6   : > { %v1974_v41 = vsub.f32 %v969_v15, %v994_v38  ;;  %v1976_v42 = vsub.f32 %v968_v16, %v993_v39  ;;  %1020 = vadd.xlane.f32.xlu0 %v1008_v40 }
 0x5a7   : > { %v986_v43 = vpop.xlane.xlu1 %985 }
 0x5a8   : > { %v995_v44 = vmul.f32 0.0078125, %v986_v43  ;;  %v1010_v45 = vmul.f32 %v1974_v41, %v1974_v41  ;;  %v1009_v46 = vmul.f32 %v1976_v42, %v1976_v42 }
 0x5aa   : > { %v1982_v47 = vsub.f32 %v970_v8, %v995_v44  ;;  %1024 = vadd.xlane.f32.xlu0 %v1010_v45  ;;  %1022 = vadd.xlane.f32.xlu1 %v1009_v46 }
 0x5ac   : > { %v1011_v48 = vmul.f32 %v1982_v47, %v1982_v47 }
 0x5ae   : > { %1026 = vadd.xlane.f32.xlu1 %v1011_v48 }
 0x624   : > { %v1017_v49 = vpop.xlane.xlu0 %1016 }
 0x625   : > { %v1030_v50 = vmul.f32 0.0078125, %v1017_v49 }
 0x627   : > { %v1038_v51 = vadd.f32 1e-05, %v1030_v50 }
 0x628   : > { %v1013_v52 = vpop.xlane.xlu0 %1012  ;;  %v1019_v53 = vpop.xlane.xlu1 %1018 }
 0x629   : > { %1530 = vrsqrt.f32 %v1038_v51  ;;  %v1028_v54 = vmul.f32 0.0078125, %v1013_v52  ;;  %v1031_v55 = vmul.f32 0.0078125, %v1019_v53 }
 0x62b   : > { %v1036_v56 = vadd.f32 1e-05, %v1028_v54  ;;  %v1039_v57 = vadd.f32 1e-05, %v1031_v55 }
 0x62c   : > { %v1015_v58 = vpop.xlane.xlu1 %1014 }
 0x62d   : > { %1532 = vrsqrt.f32 %v1036_v56  ;;  %v1029_v59 = vmul.f32 0.0078125, %v1015_v58 }
 0x62e   : > { %1534 = vrsqrt.f32 %v1039_v57 }
 0x62f   : > { %v1021_v60 = vpop.xlane.xlu0 %1020  ;;  %v1037_v61 = vadd.f32 1e-05, %v1029_v59 }
 0x630   : > { %v1032_v62 = vmul.f32 0.0078125, %v1021_v60 }
 0x631   : > { %1536 = vrsqrt.f32 %v1037_v61 }
 0x632   : > { %v1040_v63 = vadd.f32 1e-05, %v1032_v62 }
 0x633   : > { %v1025_v0 = vpop.xlane.xlu0 %1024  ;;  %v1023_v1 = vpop.xlane.xlu1 %1022 }
 0x634   : > { %1538 = vrsqrt.f32 %v1040_v63  ;;  %v1034_v2 = vmul.f32 0.0078125, %v1025_v0  ;;  %v1033_v3 = vmul.f32 0.0078125, %v1023_v1 }
 0x636   : > { %v1042_v4 = vadd.f32 1e-05, %v1034_v2  ;;  %v1041_v5 = vadd.f32 1e-05, %v1033_v3  ;;  %v1531_v6 = vpop.eup %1530 }
 0x637   : > { %v1027_v9 = vpop.xlane.xlu1 %1026  ;;  %v1054_v11 = vmul.f32 %v1531_v6, %v1954_v18 }
 0x638   : > { %1540 = vrsqrt.f32 %v1042_v4  ;;  %v1035_v12 = vmul.f32 0.0078125, %v1027_v9 }
 0x639   : > { %1542 = vrsqrt.f32 %v1041_v5  ;;  %v1069_v14 = vmul.f32 %v1253_v7, %v1054_v11 }
 0x63a   : > { %v1043_v20 = vadd.f32 1e-05, %v1035_v12  ;;  %v1533_v15 = vpop.eup %1532 }
 0x63b   : > { %v1535_v16 = vpop.eup %1534  ;;  %v1084_v8 = vadd.f32 %v1254_v13, %v1069_v14  ;;  %v1052_v21 = vmul.f32 %v1533_v15, %v1958_v28 }
 0x63c   : > { %1544 = vrsqrt.f32 %v1043_v20  ;;  %v1055_v17 = vmul.f32 %v1535_v16, %v1960_v26 }
 0x63d   : > { %1092 = vst [vmem:[%s1997_s13 + $0x10] sm:$0xff] %v1084_v8  ;;  %v1067_v18 = vmul.f32 %v1253_v7, %v1052_v21 }
 0x63e   : > { %v1537_v10 = vpop.eup %1536  ;;  %v1070_v19 = vmul.f32 %v1253_v7, %v1055_v17 }
 0x63f   : > { %v1082_v23 = vadd.f32 %v1254_v13, %v1067_v18  ;;  %v1053_v22 = vmul.f32 %v1537_v10, %v1966_v32 }
 0x640   : > { %v1085_v28 = vadd.f32 %v1254_v13, %v1070_v19 }
 0x641   : > { %v1539_v25 = vpop.eup %1538  ;;  %1090 = vst [vmem:[%s1997_s13] sm:$0xff] %v1082_v23  ;;  %v1068_v24 = vmul.f32 %v1253_v7, %v1053_v22 }
 0x642   : > { %v1056_v26 = vmul.f32 %v1539_v25, %v1968_v34  ;;  %1093 = vst [vmem:[%s1997_s13 + $0x18] sm:$0xff] %v1085_v28 }
 0x643   : > { %v1083_v29 = vadd.f32 %v1254_v13, %v1068_v24 }
 0x644   : > { %v1071_v27 = vmul.f32 %v1253_v7, %v1056_v26 }
 0x645   : > { %v1541_v30 = vpop.eup %1540  ;;  %1091 = vst [vmem:[%s1997_s13 + $0x8] sm:$0xff] %v1083_v29 }
 0x646   : > { %v1543_v31 = vpop.eup %1542  ;;  %v1086_v33 = vadd.f32 %v1254_v13, %v1071_v27  ;;  %v1058_v35 = vmul.f32 %v1541_v30, %v1974_v41 }
 0x647   : > { %v1057_v32 = vmul.f32 %v1543_v31, %v1976_v42 }
 0x648   : > { %1094 = vst [vmem:[%s1997_s13 + $0x20] sm:$0xff] %v1086_v33  ;;  %v1073_v36 = vmul.f32 %v1253_v7, %v1058_v35 }
 0x649   : > { %v1545_v34 = vpop.eup %1544  ;;  %v1072_v37 = vmul.f32 %v1253_v7, %v1057_v32 }
 0x64a   : > { %v1088_v38 = vadd.f32 %v1254_v13, %v1073_v36  ;;  %v1059_v39 = vmul.f32 %v1545_v34, %v1982_v47 }
 0x64b   : > { %v1087_v40 = vadd.f32 %v1254_v13, %v1072_v37 }
 0x64c   : > { %1096 = vst [vmem:[%s1997_s13 + $0x30] sm:$0xff] %v1088_v38  ;;  %v1074_v43 = vmul.f32 %v1253_v7, %v1059_v39 }
 0x64d   : > { %1095 = vst [vmem:[%s1997_s13 + $0x28] sm:$0xff] %v1087_v40 }
 0x64e   : > { %v1089_v41 = vadd.f32 %v1254_v13, %v1074_v43 }
 0x650   : > { %1097 = vst [vmem:[%s1997_s13 + $0x38] sm:$0xff] %v1089_v41 }
 0x651   : > { %1639 = shalt.err (!%p1636_p9)
}
 0x652   : > { %s1640_s6 = scalar_lea.hbm %s2016_s11, 1024  ;;  %s1644_s10 = scalar_lea.hbm %s2067_s5, 2048 }
 0x653   : > { %p1641_p13 = scmp.ne.s32.totalorder %s2016_s11, %s1640_s6  ;;  %p1645_p4 = scmp.lt.s32.totalorder %s2016_s11, %s2067_s5 }
 0x654   : > { %p1646_p8 = scmp.lt.s32.totalorder %s1644_s10, %s1640_s6 }
 0x655   : > { %p1642_p5 = pnand %p1641_p13, %p2083_p10 }
 0x656   : > { %p1647_p7 = por %p1646_p8, %p1645_p4 }
 0x657   : > { %p1643_p0 = pneg %p1642_p5 }
 0x659   : > { %p1648_p11 = pnand %p1647_p7, %p1643_p0 }
 0x65b   : > { %1651 = shalt.err (!%p1648_p11)
}
 0x65c   : > { %s1707_s14 = smov 128   ;;  %s1708_s8 = smov 8  }
 0x65d   : > { %1392 = dma.vmem_to_hbm [thread:$0]  (%p2083_p10), %s2018_s29, 1024, %s2016_s11, %s1099_s15, %s1707_s14, %s1707_s14, %s1708_s8  }
 0x65e PF: > { %s1127_s9 = sand.u32 1, %s1682_s18   ;;  %p2084_p1 = scmp.ne.s32.totalorder %s2073_s25, 0 }
 0x65f   : > { %p2085_p2 = scmp.ge.s32.totalorder %s1694_s21, 2  ;;  %s1128_s16 = scalar_lea.sflag [#allocation4], %s1127_s9 }
 0x661   : > { %p1406_p6 = pnand %p2085_p2, %p2084_p1 }
 0x663   : > { %p1407_p12 = pneg %p1406_p6 }
 0x665   : > { %1677 = dma.done.wait (%p1407_p12), %s1128_s16, 1024  }
 0x666   : > { %1679 = vsyncadd (%p1407_p12), %s1128_s16, 4294966272  ;;  %p19_p3 = scmp.ge.s32.totalorder %s1811_s17, 4   ;;  %s2086_s18 = smov %s1686_s19 }
 0x667   : > { %s2087_s19 = smov %s1690_s20  ;;  %s2088_s20 = smov %s1820_s28 }
 0x668   : > { %s2089_s21 = smov %s1811_s17  ;;  %21 = sbr.rel (!%p19_p3) target bundleno = 6 (0x6), region = 93 }
 0x66d   :  { %1133 = vsyncpa [#allocation3], 1 }
 0x66e   :  { %1135 = vsyncpa [#allocation3 + $0x1], 1 }
 0x66f   :  { %1136 = vsyncpa [#allocation6], 1 }
 0x670   :  { %1137 = vsyncpa [#allocation4], 1 }
 0x671   :  { %1139 = vsyncpa [#allocation4 + $0x1], 1 }

</bundles_post_ra>
